<compile_context>
chip_gen: v7x
topology: tpu7x:2x2x1
jax: 0.10.0
libtpu: 0.0.40
codegen_flags: <defaults>
</compile_context>

<pallas_src>
import functools

import jax
import jax.numpy as jnp
from jax import lax
from jax.experimental import pallas as pl
from jax.experimental.pallas import tpu as pltpu

_MIB = 1024 * 1024


# ---------------------------------------------------------------------------
# Helpers
# ---------------------------------------------------------------------------
def _vmem_limit_bytes():
    """Generation-aware scoped VMEM limit (conservative fallback)."""
    try:
        cap = int(pltpu.get_tpu_info().vmem_capacity_bytes)
    except Exception:
        return 32 * _MIB                      # safe on every generation (v7x: 64 MiB total)
    # v7x (64 MiB) -> 32 MiB, v5e/v6e (128 MiB) -> 64 MiB.
    return max(32 * _MIB, min(cap // 2, 64 * _MIB))


def _divisors(n):
    return [d for d in range(1, n + 1) if n % d == 0]


def _pick_batch_tile_fused(B, per_item_bytes, budget, min_bytes=_MIB):
    """Smallest batch tile whose (tb, C, L) block is >= min_bytes (amortize the
    ~0.35us per-grid-step overhead) while fitting the VMEM budget.  Returns
    None when even a single batch element does not fit (-> split path)."""
    fitting = [d for d in _divisors(B) if d * per_item_bytes <= budget]
    if not fitting:
        return None
    for d in fitting:
        if d * per_item_bytes >= min_bytes:
            return d
    return fitting[-1]


def _pick_l_tile(L_pad, bytes_per_l, target_bytes):
    """Largest multiple of 128 dividing L_pad with block <= target_bytes (>=128)."""
    assert L_pad % 128 == 0
    cap = max(128, (target_bytes // max(bytes_per_l, 1)) // 128 * 128)
    best, t = 128, 128
    limit = min(L_pad, cap)
    while t <= limit:
        if L_pad % t == 0:
            best = t
        t += 128
    return best


def _accumulate_lane_sum(x_ref, acc_ref):
    """acc_ref[(tb, C, 128) f32] += lane-folded sum of x_ref[(tb, C, TL)].

    TL must be a multiple of 128.  Uses plain VPU lane-wise adds over 128-wide
    chunks; the single cross-lane (XLU) reduce over the 128 lanes happens later,
    once, at finalize — keeps the streaming pass off the XLU bottleneck.
    """
    tl = x_ref.shape[-1]
    n = tl // 128

    def body(j, carry):
        off = pl.multiple_of(j * 128, 128)
        acc_ref[...] += x_ref[:, :, pl.ds(off, 128)].astype(jnp.float32)
        return carry

    lax.fori_loop(0, n, body, 0, unroll=(True if n <= 32 else 16))


# ---------------------------------------------------------------------------
# Fused path: grid over batch, full (tb, C, L) slab per step.
# ---------------------------------------------------------------------------
def _se1d_fused_kernel(x_ref, w1t_ref, w2t_ref, o_ref, acc_ref, *, inv_l):
    # x_ref/o_ref: (tb, C, L); w1t: (C, H); w2t: (H, C); acc_ref: (tb, C, 128) f32
    L = x_ref.shape[-1]

    # Squeeze: global average pool over L with f32 accumulation.
    if L % 128 == 0:
        acc_ref[...] = jnp.zeros_like(acc_ref)
        _accumulate_lane_sum(x_ref, acc_ref)
        pooled = jnp.sum(acc_ref[...], axis=-1) * inv_l                        # (tb, C)
    else:
        pooled = jnp.sum(x_ref[...].astype(jnp.float32), axis=-1) * inv_l

    # Excite: Linear(C->H) + ReLU, Linear(H->C) + Sigmoid (row form, lane-dense).
    h = jnp.maximum(
        jnp.dot(pooled, w1t_ref[...], preferred_element_type=jnp.float32), 0.0)
    alpha = jax.nn.sigmoid(
        jnp.dot(h, w2t_ref[...], preferred_element_type=jnp.float32))          # (tb, C)

    # Rescale in the input dtype (sigmoid output lies in (0,1): bf16-safe).
    o_ref[...] = (x_ref[...] * alpha.astype(o_ref.dtype)[:, :, None]).astype(o_ref.dtype)


# ---------------------------------------------------------------------------
# Split path, kernel 1: streaming mean over L -> alpha.
# grid = (B, L_tiles): batch is "parallel", the L reduction axis is last and
# "arbitrary"; alpha block is resident across it (pl.when init / finalize).
# ---------------------------------------------------------------------------
def _se1d_alpha_kernel(x_ref, w1t_ref, w2t_ref, alpha_ref, acc_ref, *, inv_l):
    k = pl.program_id(1)

    @pl.when(k == 0)
    def _():
        acc_ref[...] = jnp.zeros_like(acc_ref)

    # Lane-wise partial sums of this (1, C, tl) tile (VPU adds only).
    _accumulate_lane_sum(x_ref, acc_ref)

    @pl.when(k == pl.num_programs(1) - 1)
    def _():
        pooled = jnp.sum(acc_ref[...], axis=-1) * inv_l                         # (1, C)
        h = jnp.maximum(
            jnp.dot(pooled, w1t_ref[...], preferred_element_type=jnp.float32), 0.0)
        a = jnp.dot(h, w2t_ref[...], preferred_element_type=jnp.float32)        # (1, C)
        alpha_ref[...] = jax.nn.sigmoid(a)[:, None, :]                          # (1, 1, C)


# ---------------------------------------------------------------------------
# Split path, kernel 2: streaming broadcast multiply over big lane-dense tiles.
# ---------------------------------------------------------------------------
def _se1d_scale_kernel(alpha_ref, x_ref, o_ref):
    # alpha_ref: (1, C, 1) in x dtype; x_ref / o_ref: (1, C, tl) — no f32 upcast.
    o_ref[...] = (x_ref[...] * alpha_ref[...]).astype(o_ref.dtype)


# ---------------------------------------------------------------------------
# Wrapper
# ---------------------------------------------------------------------------
def se_layer_1d(x, w1, w2, *, l_tile=None, vmem_limit_bytes=None,
                fused_block_bytes=None, force_split=False):
    """SELayer1D forward.  x: (B, C, L); w1: (C//r, C); w2: (C, C//r)."""
    B, C, L = x.shape
    H = w1.shape[0]
    assert w1.shape == (H, C) and w2.shape == (C, H)

    # Trace-time transposes (tiny): lane-dense row-form GEMM operands.
    w1t = jnp.transpose(w1)   # (C, H)
    w2t = jnp.transpose(w2)   # (H, C)

    itemsize = jnp.dtype(x.dtype).itemsize
    x_bytes = B * C * L * itemsize
    w_bytes = (w1.size + w2.size) * jnp.dtype(w1.dtype).itemsize

    vmem_limit = vmem_limit_bytes if vmem_limit_bytes is not None else _vmem_limit_bytes()
    # 2x in + 2x out double buffers + f32 accumulator / temps + headroom.
    block_budget = fused_block_bytes if fused_block_bytes is not None else vmem_limit // 6
    inv_l = 1.0 / float(L)

    # -------------------- fused path: one read + one write of x --------------------
    tb = None if force_split else _pick_batch_tile_fused(B, C * L * itemsize, block_budget)
    if tb is not None:
        grid_b = B // tb
        return pl.pallas_call(
            functools.partial(_se1d_fused_kernel, inv_l=inv_l),
            out_shape=jax.ShapeDtypeStruct((B, C, L), x.dtype),
            grid_spec=pltpu.PrefetchScalarGridSpec(
                num_scalar_prefetch=0,
                grid=(grid_b,),
                in_specs=[
                    pl.BlockSpec((tb, C, L), lambda i: (i, 0, 0)),
                    pl.BlockSpec((C, H), lambda i: (0, 0)),
                    pl.BlockSpec((H, C), lambda i: (0, 0)),
                ],
                out_specs=pl.BlockSpec((tb, C, L), lambda i: (i, 0, 0)),
                scratch_shapes=[pltpu.VMEM((tb, C, 128), jnp.float32)],
            ),
            compiler_params=pltpu.CompilerParams(
                dimension_semantics=("parallel",),
                vmem_limit_bytes=vmem_limit,
            ),
            cost_estimate=pl.CostEstimate(
                flops=int(2 * B * C * L + 4 * B * C * H),
                transcendentals=int(B * C),
                bytes_accessed=int(2 * x_bytes + w_bytes),
            ),
        )(x, w1t, w2t)

    # -------------------- split path (very long L) --------------------
    # Pad L to a multiple of 128: zeros don't perturb the sum (true mean uses
    # 1/L) and the padded output tail is sliced away.
    L_pad = int(pl.cdiv(L, 128)) * 128
    x_p = x if L_pad == L else jnp.pad(x, ((0, 0), (0, 0), (0, L_pad - L)))

    split_target = min(8 * _MIB, block_budget)
    if l_tile is not None:
        assert l_tile % 128 == 0 and L_pad % l_tile == 0, \
            "l_tile must be a multiple of 128 dividing the (padded) L"
        tl = l_tile
    else:
        tl = _pick_l_tile(L_pad, C * itemsize, split_target)
    num_tiles = L_pad // tl

    # (1) squeeze + excite: tiled mean over L, then the two tiny GEMMs.
    alpha = pl.pallas_call(
        functools.partial(_se1d_alpha_kernel, inv_l=inv_l),
        out_shape=jax.ShapeDtypeStruct((B, 1, C), jnp.float32),
        grid_spec=pltpu.PrefetchScalarGridSpec(
            num_scalar_prefetch=0,
            grid=(B, num_tiles),
            in_specs=[
                pl.BlockSpec((1, C, tl), lambda i, k: (i, 0, k)),
                pl.BlockSpec((C, H), lambda i, k: (0, 0)),
                pl.BlockSpec((H, C), lambda i, k: (0, 0)),
            ],
            out_specs=pl.BlockSpec((1, 1, C), lambda i, k: (i, 0, 0)),
            scratch_shapes=[pltpu.VMEM((1, C, 128), jnp.float32)],
        ),
        compiler_params=pltpu.CompilerParams(
            dimension_semantics=("parallel", "arbitrary"),
            vmem_limit_bytes=vmem_limit,
        ),
        cost_estimate=pl.CostEstimate(
            flops=int(B * C * L_pad + 4 * B * C * H),
            transcendentals=int(B * C),
            bytes_accessed=int(B * C * L_pad * itemsize + w_bytes + B * C * 4),
        ),
    )(x_p, w1t, w2t)

    # Cast alpha to x's dtype once; the scale pass stays in the input dtype.
    alpha3 = alpha.astype(x.dtype).reshape(B, C, 1)

    # (2) broadcast multiply, streamed over big lane-dense L tiles.
    out = pl.pallas_call(
        _se1d_scale_kernel,
        out_shape=jax.ShapeDtypeStruct((B, C, L_pad), x.dtype),
        grid_spec=pltpu.PrefetchScalarGridSpec(
            num_scalar_prefetch=0,
            grid=(B, num_tiles),
            in_specs=[
                pl.BlockSpec((1, C, 1), lambda i, k: (i, 0, 0)),
                pl.BlockSpec((1, C, tl), lambda i, k: (i, 0, k)),
            ],
            out_specs=pl.BlockSpec((1, C, tl), lambda i, k: (i, 0, k)),
        ),
        compiler_params=pltpu.CompilerParams(
            dimension_semantics=("parallel", "parallel"),
            vmem_limit_bytes=vmem_limit,
        ),
        cost_estimate=pl.CostEstimate(
            flops=int(B * C * L_pad),
            transcendentals=0,
            bytes_accessed=int(2 * B * C * L_pad * itemsize + B * C * itemsize),
        ),
    )(alpha3, x_p)

    return out if L_pad == L else out[:, :, :L]


def se_layer_1d_ref(x, w1, w2):
    pooled = jnp.mean(x, axis=-1)                       # (B, C)
    h = jnp.maximum(pooled @ w1.T, 0.0)                 # (B, H)
    alpha = jax.nn.sigmoid(h @ w2.T)                    # (B, C)
    return x * alpha[..., None]


if __name__ == "__main__":
    # SELayer1D(nChannels=64, reduction=16)
    B, C, L, reduction = 2, 64, 128, 16
    H = C // reduction

    key = jax.random.PRNGKey(0)
    kx, k1, k2 = jax.random.split(key, 3)
    x = jax.random.normal(kx, (B, C, L), dtype=jnp.float32)
    # Deterministic synthetic weights (PyTorch Linear weight shapes: (out, in)).
    w1 = jax.random.normal(k1, (H, C), dtype=jnp.float32) * (1.0 / jnp.sqrt(C))
    w2 = jax.random.normal(k2, (C, H), dtype=jnp.float32) * (1.0 / jnp.sqrt(H))

    # Fused batch-gridded path (small problem).
    out = jax.block_until_ready(se_layer_1d(x, w1, w2))
    ref = se_layer_1d_ref(x, w1, w2)
    assert out.shape == (B, C, L)
    assert jnp.allclose(out, ref, atol=1e-5, rtol=1e-5), "fused path mismatch"

    # Force the split path (streaming mean + scale) to validate the L tiling.
    L2 = 512
    x2 = jax.random.normal(kx, (B, C, L2), dtype=jnp.float32)
    out2 = jax.block_until_ready(se_layer_1d(x2, w1, w2, force_split=True, l_tile=128))
    ref2 = se_layer_1d_ref(x2, w1, w2)
    assert jnp.allclose(out2, ref2, atol=1e-5, rtol=1e-5), "split path mismatch"

    # Split path with L not a multiple of 128 (padding fallback).
    L3 = 200
    x3 = jax.random.normal(kx, (B, C, L3), dtype=jnp.float32)
    out3 = jax.block_until_ready(se_layer_1d(x3, w1, w2, force_split=True))
    ref3 = se_layer_1d_ref(x3, w1, w2)
    assert out3.shape == (B, C, L3)
    assert jnp.allclose(out3, ref3, atol=1e-5, rtol=1e-5), "padded split path mismatch"

    print("KERNEL_OK")
</pallas_src>

<mosaic_0001>
module attributes {stable_mosaic.version = 11 : i64} {
  func.func @_se1d_fused_kernel(%arg0: i32, %arg1: memref<2x64x128xf32, #tpu.memory_space<vmem>>, %arg2: memref<64x4xf32, #tpu.memory_space<vmem>>, %arg3: memref<4x64xf32, #tpu.memory_space<vmem>>, %arg4: memref<2x64x128xf32, #tpu.memory_space<vmem>>, %arg5: memref<2x64x128xf32, #tpu.memory_space<vmem>>) attributes {dimension_semantics = [#tpu.dimension_semantics<parallel>], iteration_bounds = array<i64: 1>, scalar_prefetch = 0 : i64, scratch_operands = 1 : i64, tpu.core_type = #tpu.core_type<tc>, window_params = [{transform_indices = @transform_0, window_bounds = array<i64: 2, 64, 128>}, {pipeline_mode = #tpu.pipeline_mode<synchronous>, transform_indices = @transform_1, window_bounds = array<i64: 64, 4>}, {pipeline_mode = #tpu.pipeline_mode<synchronous>, transform_indices = @transform_2, window_bounds = array<i64: 4, 64>}, {transform_indices = @transform_3, window_bounds = array<i64: 2, 64, 128>}]} {
    %cst = arith.constant 0.000000e+00 : f32
    %0 = vector.broadcast %cst : f32 to vector<2x64x128xf32>
    %c0 = arith.constant 0 : index
    %c0_0 = arith.constant 0 : index
    %c0_1 = arith.constant 0 : index
    %1 = vector.load %arg5[%c0, %c0_0, %c0_1] : memref<2x64x128xf32, #tpu.memory_space<vmem>>, vector<2x64x128xf32>
    tpu.vector_store %arg5[%c0, %c0_0, %c0_1], %0 {strides = array<i32>} : memref<2x64x128xf32, #tpu.memory_space<vmem>>, vector<2x64x128xf32>,
    %c0_i32 = arith.constant 0 : i32
    %c128_i32 = arith.constant 128 : i32
    %2 = arith.muli %c0_i32, %c128_i32 : i32
    %3 = tpu.assume_multiple %2, 128 : i32
    %c0_2 = arith.constant 0 : index
    %c0_3 = arith.constant 0 : index
    %c0_4 = arith.constant 0 : index
    %4 = vector.load %arg5[%c0_2, %c0_3, %c0_4] : memref<2x64x128xf32, #tpu.memory_space<vmem>>, vector<2x64x128xf32>
    %c0_5 = arith.constant 0 : index
    %c0_6 = arith.constant 0 : index
    %5 = arith.index_cast %3 : i32 to index
    %6 = vector.load %arg1[%c0_5, %c0_6, %5] : memref<2x64x128xf32, #tpu.memory_space<vmem>>, vector<2x64x128xf32>
    %7 = arith.addf %4, %6 : vector<2x64x128xf32>
    %c0_7 = arith.constant 0 : index
    %c0_8 = arith.constant 0 : index
    %c0_9 = arith.constant 0 : index
    %8 = vector.load %arg5[%c0_7, %c0_8, %c0_9] : memref<2x64x128xf32, #tpu.memory_space<vmem>>, vector<2x64x128xf32>
    tpu.vector_store %arg5[%c0_7, %c0_8, %c0_9], %7 {strides = array<i32>} : memref<2x64x128xf32, #tpu.memory_space<vmem>>, vector<2x64x128xf32>,
    %c1_i32 = arith.constant 1 : i32
    %c0_10 = arith.constant 0 : index
    %c0_11 = arith.constant 0 : index
    %c0_12 = arith.constant 0 : index
    %9 = vector.load %arg5[%c0_10, %c0_11, %c0_12] : memref<2x64x128xf32, #tpu.memory_space<vmem>>, vector<2x64x128xf32>
    %cst_13 = arith.constant dense<0.000000e+00> : vector<2x64xf32>
    %10 = vector.multi_reduction <add>, %9, %cst_13 [2] : vector<2x64x128xf32> to vector<2x64xf32>
    %cst_14 = arith.constant 7.812500e-03 : f32
    %11 = vector.broadcast %cst_14 : f32 to vector<2x64xf32>
    %12 = arith.mulf %10, %11 : vector<2x64xf32>
    %c0_15 = arith.constant 0 : index
    %c0_16 = arith.constant 0 : index
    %13 = vector.load %arg2[%c0_15, %c0_16] : memref<64x4xf32, #tpu.memory_space<vmem>>, vector<64x4xf32>
    %cst_17 = arith.constant dense<0.000000e+00> : vector<2x4xf32>
    %14 = tpu.matmul %12, %13, %cst_17 {dimension_numbers = #tpu.dot_dimension_numbers<[1], [0], [0], [1], [0, 0, 1, 1], [], []>} : vector<2x64xf32>, vector<64x4xf32>, vector<2x4xf32> -> vector<2x4xf32>
    %cst_18 = arith.constant 0.000000e+00 : f32
    %15 = vector.broadcast %cst_18 : f32 to vector<2x4xf32>
    %16 = arith.maximumf %14, %15 : vector<2x4xf32>
    %c0_19 = arith.constant 0 : index
    %c0_20 = arith.constant 0 : index
    %17 = vector.load %arg3[%c0_19, %c0_20] : memref<4x64xf32, #tpu.memory_space<vmem>>, vector<4x64xf32>
    %cst_21 = arith.constant dense<0.000000e+00> : vector<2x64xf32>
    %18 = tpu.matmul %16, %17, %cst_21 {dimension_numbers = #tpu.dot_dimension_numbers<[1], [0], [0], [1], [0, 0, 1, 1], [], []>} : vector<2x4xf32>, vector<4x64xf32>, vector<2x64xf32> -> vector<2x64xf32>
    %19 = arith.negf %18 : vector<2x64xf32>
    %20 = math.exp %19 : vector<2x64xf32>
    %cst_22 = arith.constant 1.000000e+00 : f32
    %21 = vector.broadcast %cst_22 : f32 to vector<2x64xf32>
    %22 = arith.addf %21, %20 : vector<2x64xf32>
    %23 = arith.divf %21, %22 : vector<2x64xf32>
    %c0_23 = arith.constant 0 : index
    %c0_24 = arith.constant 0 : index
    %c0_25 = arith.constant 0 : index
    %24 = vector.load %arg1[%c0_23, %c0_24, %c0_25] : memref<2x64x128xf32, #tpu.memory_space<vmem>>, vector<2x64x128xf32>
    %25 = vector.shape_cast %23 : vector<2x64xf32> to vector<2x64x1xf32>
    %26 = vector.broadcast %25 : vector<2x64x1xf32> to vector<2x64x128xf32>
    %27 = arith.mulf %24, %26 : vector<2x64x128xf32>
    %c0_26 = arith.constant 0 : index
    %c0_27 = arith.constant 0 : index
    %c0_28 = arith.constant 0 : index
    %28 = vector.load %arg4[%c0_26, %c0_27, %c0_28] : memref<2x64x128xf32, #tpu.memory_space<vmem>>, vector<2x64x128xf32>
    tpu.vector_store %arg4[%c0_26, %c0_27, %c0_28], %27 {strides = array<i32>} : memref<2x64x128xf32, #tpu.memory_space<vmem>>, vector<2x64x128xf32>,
    return
  }
  func.func @transform_0(%arg0: i32) -> (i32, i32, i32) {
    %c0_i32 = arith.constant 0 : i32
    %c0_i32_0 = arith.constant 0 : i32
    %c0_i32_1 = arith.constant 0 : i32
    return %arg0, %c0_i32, %c0_i32_0 : i32, i32, i32
  }
  func.func @transform_1(%arg0: i32) -> (i32, i32) {
    %c0_i32 = arith.constant 0 : i32
    %c0_i32_0 = arith.constant 0 : i32
    %c0_i32_1 = arith.constant 0 : i32
    return %c0_i32, %c0_i32_0 : i32, i32
  }
  func.func @transform_2(%arg0: i32) -> (i32, i32) {
    %c0_i32 = arith.constant 0 : i32
    %c0_i32_0 = arith.constant 0 : i32
    %c0_i32_1 = arith.constant 0 : i32
    return %c0_i32, %c0_i32_0 : i32, i32
  }
  func.func @transform_3(%arg0: i32) -> (i32, i32, i32) {
    %c0_i32 = arith.constant 0 : i32
    %c0_i32_0 = arith.constant 0 : i32
    %c0_i32_1 = arith.constant 0 : i32
    return %arg0, %c0_i32, %c0_i32_0 : i32, i32, i32
  }
}

</mosaic_0001>

<bundles_post_ra>
// kernel: tpu_custom_call.1
= control target key start
LH: loop header
LB: loop body
LE: loop exit
PB: predicated region body
PF: predicated region fallthrough
CT: control target
= control target key end

     0   :  { %8 = vsyncpa [#allocation4], 0  ;;  %s869_s0 = inlined_call_operand.hbm [shape: f32[2,64,128], index: 0, kind: input, shape index: {}]   ;;  %s870_s1 = inlined_call_operand.vmem [shape: f32[64,4], index: 1, kind: input, shape index: {}]   ;;  %s871_s2 = inlined_call_operand.vmem [shape: f32[4,64], index: 2, kind: input, shape index: {}]   ;;  %s872_s3 = inlined_call_operand.hbm [shape: f32[2,64,128], index: 3, kind: output, shape index: {}]  }
   0x1   :  { %9 = vsyncpa [#allocation5], 0  ;;  %s697_s12 = smov [#allocation3]   ;;  %s649_s16 = scalar_lea.hbm %s869_s0, 2048 }
   0x2   :  { %s15_s13 = sshll.u32 %s697_s12, 4  ;;  %p650_p0 = scmp.ne.s32.totalorder %s869_s0, %s649_s16  ;;  %s16_s13 = int_to_ptr.vmem [resolvable:$true] %s15_s13 }
   0x3   :  { %p653_p1 = scmp.lt.u32.totalorder %s649_s16, %s869_s0 }
   0x5   :  { %p655_p2 = pnand %p653_p1, %p650_p0 }
   0x7   :  { %658 = shalt.err (!%p655_p2)
}
   0x8   :  { %s659_s21 = scalar_lea.vmem %s16_s13, 2048  ;;  %p664_p4 = scmp.lt.s32.totalorder %s16_s13, %s16_s13 }
   0x9   :  { %p660_p3 = scmp.ne.s32.totalorder %s16_s13, %s659_s21  ;;  %p665_p5 = scmp.lt.s32.totalorder %s659_s21, %s659_s21 }
   0xb   :  { %p666_p6 = por %p665_p5, %p664_p4 }
   0xd   :  { %p667_p7 = pnand %p666_p6, %p660_p3 }
   0xf   :  { %670 = shalt.err (!%p667_p7)
}
  0x10   :  { %s698_s22 = smov 128   ;;  %s699_s23 = smov 8  }
  0x11   :  { %21 = dma.hbm_to_vmem [thread:$0]  %s869_s0, 2048, %s16_s13, [#allocation4], %s698_s22, %s698_s22, %s699_s23  }
  0x12   :  { %693 = dma.done.wait [#allocation4], 2048  }
  0x13   :  { %694 = vsyncadd [#allocation4], 4294965248  ;;  %v739_v0 = vld [vmem:[#allocation3 + $0x40] sm:$0xff]  ;;  %v745_v2 = vld [vmem:[#allocation3 + $0x48] sm:$0xff]  ;;  %v700_v19 = vmov 0.0|0.0   ;;  %vm701_vm0 = vmmov 0   ;;  %v197_v34 = vlaneseq }
  0x14   :  { %v741_v1 = vld [vmem:[#allocation3] sm:$0xff]  ;;  %141 = vadd.xlane.f32.xlu1 %v739_v0  ;;  %v747_v3 = vld [vmem:[#allocation3 + $0x8] sm:$0xff]  ;;  %v751_v4 = vld [vmem:[#allocation3 + $0x50] sm:$0xff]  ;;  %626 = vmatprep.subr.bf16.mxu0 %v700_v19  ;;  %v702_v29 = vmov 0.0   ;;  %vm208_vm1 = vcmask 130112   ;;  %vm215_vm2 = vcmask 195712  }
  0x15   :  { %125 = vadd.xlane.f32.xlu0 %v741_v1  ;;  %v753_v5 = vld [vmem:[#allocation3 + $0x10] sm:$0xff]  ;;  %v757_v6 = vld [vmem:[#allocation3 + $0x58] sm:$0xff]  ;;  %v763_v8 = vld [vmem:[#allocation3 + $0x60] sm:$0xff]  ;;  %618 = vmatprep.mubr.msk.f32.mxu0 %vm701_vm0, %v702_v29  ;;  %v198_v37 = vand.u32 127, %v197_v34  ;;  %v811_v38 = vshrl.u32 %v197_v34, 7  ;;  %vm222_vm3 = vcmask 261312  }
  0x16   :  { %v759_v7 = vld [vmem:[#allocation3 + $0x18] sm:$0xff]  ;;  %v765_v9 = vld [vmem:[#allocation3 + $0x20] sm:$0xff]  ;;  %v769_v10 = vld [vmem:[#allocation3 + $0x68] sm:$0xff]  ;;  %621 = vmatprep.subr.mxu1 %v702_v29  ;;  %623 = vmatprep.mubr.msk.f32.mxu1 %vm701_vm0, %v702_v29  ;;  %vm229_vm4 = vcmask 326912   ;;  %vm236_vm5 = vcmask 392512   ;;  %vm243_vm6 = vcmask 458112  }
  0x17   :  { %v771_v11 = vld [vmem:[#allocation3 + $0x28] sm:$0xff]  ;;  %v775_v12 = vld [vmem:[#allocation3 + $0x70] sm:$0xff]  ;;  %v781_v14 = vld [vmem:[#allocation3 + $0x78] sm:$0xff]  ;;  %v203_v41 = vadd.s32 4294967288, %v198_v37  ;;  %v210_v42 = vadd.s32 4294967280, %v198_v37  ;;  %v217_v43 = vadd.s32 4294967272, %v198_v37  ;;  %v201_v45 = vsub.s32 %v198_v37, %v811_v38 }
  0x18   :  { %143 = vadd.xlane.f32.xlu1 %v745_v2  ;;  %v777_v13 = vld [vmem:[#allocation3 + $0x30] sm:$0xff]  ;;  %v783_v15 = vld [vmem:[#allocation3 + $0x38] sm:$0xff]  ;;  %v173_v16 = vld [vmem:[%s870_s1] sm:$0xff]  ;;  %v224_v44 = vadd.s32 4294967264, %v198_v37  ;;  %v231_v50 = vadd.s32 4294967256, %v198_v37  ;;  %v238_v52 = vadd.s32 4294967248, %v198_v37 }
  0x19   :  { %127 = vadd.xlane.f32.xlu0 %v747_v3  ;;  %v174_v17 = vld [vmem:[%s870_s1 + $0x8] sm:$0xff]  ;;  %v175_v20 = vld [vmem:[%s870_s1 + $0x10] sm:$0xff]  ;;  %v176_v21 = vld [vmem:[%s870_s1 + $0x18] sm:$0xff]  ;;  %v206_v48 = vsub.s32 %v203_v41, %v811_v38  ;;  %v213_v49 = vsub.s32 %v210_v42, %v811_v38  ;;  %v220_v51 = vsub.s32 %v217_v43, %v811_v38  ;;  %vm250_vm7 = vcmask 523712  }
  0x1a   :  { %v627_v18 = vpack.c.bf16 %v174_v17, %v173_v16  ;;  %v630_v22 = vpack.c.bf16 %v176_v21, %v175_v20  ;;  %v177_v23 = vld [vmem:[%s870_s1 + $0x20] sm:$0xff]  ;;  %v178_v24 = vld [vmem:[%s870_s1 + $0x28] sm:$0xff]  ;;  %v179_v26 = vld [vmem:[%s870_s1 + $0x30] sm:$0xff]  ;;  %v227_v55 = vsub.s32 %v224_v44, %v811_v38  ;;  %v234_v16 = vsub.s32 %v231_v50, %v811_v38 }
  0x1b   :  { %v633_v25 = vpack.c.bf16 %v178_v24, %v177_v23  ;;  %v180_v27 = vld [vmem:[%s870_s1 + $0x38] sm:$0xff]  ;;  %v245_v20 = vadd.s32 4294967240, %v198_v37  ;;  %vm291_vm8 = vcmask 1041409   ;;  %vm293_vm9 = vcmask 523264  }
  0x1c   :  { %145 = vadd.xlane.f32.xlu1 %v751_v4  ;;  %628 = vmatpush3.bf16.msra.mxu0 %v627_v18  ;;  %v636_v28 = vpack.c.bf16 %v180_v27, %v179_v26  ;;  %vm372_vm10 = vcmask 1043456   ;;  %vm368_vm11 = vcmask 31744  }
  0x1d   :  { %129 = vadd.xlane.f32.xlu0 %v753_v5  ;;  %629 = vmatprep.subr.bf16.mxu0 %v700_v19 }
  0x20   :  { %147 = vadd.xlane.f32.xlu1 %v757_v6  ;;  %631 = vmatpush3.bf16.msra.mxu0 %v630_v22 }
  0x21   :  { %131 = vadd.xlane.f32.xlu0 %v759_v7  ;;  %632 = vmatprep.subr.bf16.mxu0 %v700_v19 }
  0x24   :  { %149 = vadd.xlane.f32.xlu1 %v763_v8  ;;  %634 = vmatpush3.bf16.msra.mxu0 %v633_v25 }
  0x25   :  { %133 = vadd.xlane.f32.xlu0 %v765_v9  ;;  %635 = vmatprep.subr.bf16.mxu0 %v700_v19  ;;  %v241_v19 = vsub.s32 %v238_v52, %v811_v38 }
  0x28   :  { %151 = vadd.xlane.f32.xlu1 %v769_v10  ;;  %637 = vmatpush3.bf16.msra.mxu0 %v636_v28 }
  0x29   :  { %135 = vadd.xlane.f32.xlu0 %v771_v11 }
  0x2c   :  { %153 = vadd.xlane.f32.xlu1 %v775_v12 }
  0x2d   :  { %137 = vadd.xlane.f32.xlu0 %v777_v13 }
  0x30   :  { %155 = vadd.xlane.f32.xlu1 %v781_v14 }
  0x31   :  { %139 = vadd.xlane.f32.xlu0 %v783_v15 }
  0xa1   :  { %v142_v30 = vpop.xlane.xlu1 %141 }
  0xa2   :  { %v126_v31 = vpop.xlane.xlu0 %125  ;;  %v165_v56 = vmul.f32 0.0078125, %v142_v30 }
  0xa3   :  { %v157_v57 = vmul.f32 0.0078125, %v126_v31 }
  0xa4   :  { %v255_v25 = vrot.slane %v165_v56, %v201_v45 }
  0xa5   :  { %v144_v32 = vpop.xlane.xlu1 %143  ;;  %v202_v26 = vrot.slane %v157_v57, %v201_v45 }
  0xa6   :  { %v128_v33 = vpop.xlane.xlu0 %127  ;;  %v166_v53 = vmul.f32 0.0078125, %v144_v32 }
  0xa7   :  { %v158_v54 = vmul.f32 0.0078125, %v128_v33 }
  0xa8   :  { %v259_v21 = vrot.slane %v166_v53, %v206_v48 }
  0xa9   :  { %v146_v35 = vpop.xlane.xlu1 %145  ;;  %v207_v22 = vrot.slane %v158_v54, %v206_v48 }
  0xaa   :  { %v130_v36 = vpop.xlane.xlu0 %129  ;;  %v167_v58 = vmul.f32 0.0078125, %v146_v35  ;;  %v260_v37 = vsel %vm208_vm1, %v259_v21, %v255_v25  ;;  %v470_v25 = vsub.s32 0, %v811_v38 }
  0xab   :  { %v159_v59 = vmul.f32 0.0078125, %v130_v36 }
  0xac   :  { %v264_v27 = vrot.slane %v167_v58, %v213_v49 }
  0xad   :  { %v148_v39 = vpop.xlane.xlu1 %147  ;;  %v214_v28 = vrot.slane %v159_v59, %v213_v49 }
  0xae   :  { %v132_v40 = vpop.xlane.xlu0 %131  ;;  %v168_v62 = vmul.f32 0.0078125, %v148_v39  ;;  %v248_v39 = vsub.s32 %v245_v20, %v811_v38  ;;  %v265_v43 = vsel %vm215_vm2, %v264_v27, %v260_v37 }
  0xaf   :  { %v160_v63 = vmul.f32 0.0078125, %v132_v40  ;;  %v209_v40 = vsel %vm208_vm1, %v207_v22, %v202_v26 }
  0xb0   :  { %v269_v31 = vrot.slane %v168_v62, %v220_v51  ;;  %v216_v44 = vsel %vm215_vm2, %v214_v28, %v209_v40  ;;  %v505_v28 = vsub.s32 1, %v811_v38 }
  0xb1   :  { %v150_v46 = vpop.xlane.xlu1 %149  ;;  %v221_v32 = vrot.slane %v160_v63, %v220_v51 }
  0xb2   :  { %v134_v47 = vpop.xlane.xlu0 %133  ;;  %v169_v17 = vmul.f32 0.0078125, %v150_v46  ;;  %v270_v49 = vsel %vm222_vm3, %v269_v31, %v265_v43 }
  0xb3   :  { %v161_v18 = vmul.f32 0.0078125, %v134_v47  ;;  %v223_v50 = vsel %vm222_vm3, %v221_v32, %v216_v44 }
  0xb4   :  { %v274_v35 = vrot.slane %v169_v17, %v227_v55 }
  0xb5   :  { %v152_v60 = vpop.xlane.xlu1 %151  ;;  %v228_v36 = vrot.slane %v161_v18, %v227_v55 }
  0xb6   :  { %v136_v61 = vpop.xlane.xlu0 %135  ;;  %v170_v23 = vmul.f32 0.0078125, %v152_v60  ;;  %v275_v53 = vsel %vm229_vm4, %v274_v35, %v270_v49 }
  0xb7   :  { %v162_v24 = vmul.f32 0.0078125, %v136_v61  ;;  %v230_v54 = vsel %vm229_vm4, %v228_v36, %v223_v50 }
  0xb8   :  { %v279_v41 = vrot.slane %v170_v23, %v234_v16 }
  0xb9   :  { %v154_v29 = vpop.xlane.xlu1 %153  ;;  %v235_v42 = vrot.slane %v162_v24, %v234_v16  ;;  %v367_v16 = vld [vmem:[%s871_s2] sm:$0xf]  ;;  %s703_s2 = smov [#allocation6]  }
  0xba   :  { %v138_v30 = vpop.xlane.xlu0 %137  ;;  %v171_v33 = vmul.f32 0.0078125, %v154_v29  ;;  %v280_v55 = vsel %vm236_vm5, %v279_v41, %v275_v53  ;;  %622 = vmatpush3.msk.msra.mxu1 %vm372_vm10, %v367_v16  ;;  %s575_s15 = sshll.u32 %s703_s2, 4  ;;  %s576_s15 = int_to_ptr.vmem [resolvable:$true] %s575_s15 }
  0xbb   :  { %v163_v34 = vmul.f32 0.0078125, %v138_v30  ;;  %v237_v56 = vsel %vm236_vm5, %v235_v42, %v230_v54  ;;  %s671_s16 = scalar_lea.vmem %s576_s15, 2048  ;;  %p676_p9 = scmp.lt.s32.totalorder %s576_s15, %s576_s15 }
  0xbc   :  { %v284_v45 = vrot.slane %v171_v33, %v241_v19  ;;  %p672_p8 = scmp.ne.s32.totalorder %s576_s15, %s671_s16  ;;  %p677_p10 = scmp.lt.s32.totalorder %s671_s16, %s671_s16 }
  0xbd   :  { %v242_v46 = vrot.slane %v163_v34, %v241_v19  ;;  %v156_v47 = vpop.xlane.xlu1 %155 }
  0xbe   :  { %v140_v48 = vpop.xlane.xlu0 %139  ;;  %v172_v51 = vmul.f32 0.0078125, %v156_v47  ;;  %v285_v59 = vsel %vm243_vm6, %v284_v45, %v280_v55  ;;  %p678_p11 = por %p677_p10, %p676_p9 }
  0xbf   :  { %v164_v52 = vmul.f32 0.0078125, %v140_v48  ;;  %v244_v60 = vsel %vm243_vm6, %v242_v46, %v237_v56 }
  0xc0   :  { %v289_v57 = vrot.slane %v172_v51, %v248_v39  ;;  %p679_p12 = pnand %p678_p11, %p672_p8 }
  0xc1   :  { %v249_v58 = vrot.slane %v164_v52, %v248_v39 }
  0xc2   :  { %v290_v62 = vsel %vm250_vm7, %v289_v57, %v285_v59 }
  0xc3   :  { %v251_v61 = vsel %vm250_vm7, %v249_v58, %v244_v60 }
  0xc4   :  { %v292_v63 = vsel %vm291_vm8, %v290_v62, %v251_v61 }
  0xc5   :  { %619 = vmatmul.mubr.msk.f32.vlgmr.msra.gmra.mrb[0].mxu0 %vm293_vm9, %v292_v63 }
 0x198   :  { %v362_v17 = vpop.f32.mrb[0].mxu0 }
 0x199   :  { %v366_v18 = vmax.f32 %v362_v17, 0.0  ;;  %v620_v19 = vpop.f32.mrb[1].mxu0 }
 0x19b   :  { %624 = vmatmul.mubr.msk.f32.vlgmr.msra.gmra.mrb[0].mxu1 %vm368_vm11, %v366_v18 }
 0x26e   :  { %v442_v20 = vpop.f32.mrb[0].mxu1 }
 0x26f   :  { %v590_v21 = vmul.f32 -1.442695, %v442_v20  ;;  %v625_v22 = vpop.f32.mrb[1].mxu1 }
 0x271   :  { %645 = vpow2.f32 %v590_v21 }
 0x27b   :  { %v646_v23 = vpop.eup %645 }
 0x27c   :  { %v449_v24 = vadd.f32 1.0, %v646_v23 }
 0x27e   :  { %647 = vrcp.f32 %v449_v24 }
 0x288   :  { %v648_v26 = vpop.eup %647 }
 0x289   :  { %v471_v27 = vrot.slane %v648_v26, %v470_v25  ;;  %v506_v29 = vrot.slane %v648_v26, %v505_v28 }
 0x28b   :  { %477 = vbcast.lane.b32.xlu1 %v471_v27, 264  ;;  %473 = vbcast.lane.b32.xlu0 %v471_v27, 256 }
 0x28f   :  { %481 = vbcast.lane.b32.xlu1 %v471_v27, 272  ;;  %489 = vbcast.lane.b32.xlu0 %v471_v27, 288 }
 0x293   :  { %485 = vbcast.lane.b32.xlu1 %v471_v27, 280  ;;  %497 = vbcast.lane.b32.xlu0 %v471_v27, 304 }
 0x297   :  { %493 = vbcast.lane.b32.xlu1 %v471_v27, 296  ;;  %508 = vbcast.lane.b32.xlu0 %v506_v29, 256 }
 0x29b   :  { %501 = vbcast.lane.b32.xlu1 %v471_v27, 312  ;;  %516 = vbcast.lane.b32.xlu0 %v506_v29, 272 }
 0x29f   :  { %512 = vbcast.lane.b32.xlu1 %v506_v29, 264  ;;  %524 = vbcast.lane.b32.xlu0 %v506_v29, 288 }
 0x2a3   :  { %520 = vbcast.lane.b32.xlu1 %v506_v29, 280  ;;  %532 = vbcast.lane.b32.xlu0 %v506_v29, 304 }
 0x2a7   :  { %528 = vbcast.lane.b32.xlu1 %v506_v29, 296 }
 0x2ab   :  { %536 = vbcast.lane.b32.xlu1 %v506_v29, 312 }
 0x2fd   :  { %v478_v30 = vpop.permute.xlu1 %477  ;;  %v474_v31 = vpop.permute.xlu0 %473 }
 0x2fe   :  { %v539_v32 = vmul.f32 %v478_v30, %v747_v3  ;;  %v538_v33 = vmul.f32 %v474_v31, %v741_v1 }
 0x300   :  { %555 = vst [vmem:[#allocation6 + $0x8] sm:$0xff] %v539_v32  ;;  %554 = vst [vmem:[#allocation6] sm:$0xff] %v538_v33 }
 0x301   :  { %v482_v38 = vpop.permute.xlu1 %481  ;;  %v490_v34 = vpop.permute.xlu0 %489 }
 0x302   :  { %v540_v35 = vmul.f32 %v482_v38, %v753_v5  ;;  %v542_v36 = vmul.f32 %v490_v34, %v765_v9 }
 0x304   :  { %556 = vst [vmem:[#allocation6 + $0x10] sm:$0xff] %v540_v35  ;;  %558 = vst [vmem:[#allocation6 + $0x20] sm:$0xff] %v542_v36 }
 0x305   :  { %v486_v39 = vpop.permute.xlu1 %485  ;;  %v498_v37 = vpop.permute.xlu0 %497 }
 0x306   :  { %v541_v40 = vmul.f32 %v486_v39, %v759_v7  ;;  %v544_v41 = vmul.f32 %v498_v37, %v777_v13 }
 0x308   :  { %557 = vst [vmem:[#allocation6 + $0x18] sm:$0xff] %v541_v40  ;;  %560 = vst [vmem:[#allocation6 + $0x30] sm:$0xff] %v544_v41 }
 0x309   :  { %v494_v3 = vpop.permute.xlu1 %493  ;;  %v509_v1 = vpop.permute.xlu0 %508 }
 0x30a   :  { %v543_v42 = vmul.f32 %v494_v3, %v771_v11  ;;  %v546_v43 = vmul.f32 %v509_v1, %v739_v0 }
 0x30c   :  { %559 = vst [vmem:[#allocation6 + $0x28] sm:$0xff] %v543_v42  ;;  %562 = vst [vmem:[#allocation6 + $0x40] sm:$0xff] %v546_v43 }
 0x30d   :  { %v502_v5 = vpop.permute.xlu1 %501  ;;  %v517_v9 = vpop.permute.xlu0 %516 }
 0x30e   :  { %v545_v44 = vmul.f32 %v502_v5, %v783_v15  ;;  %v548_v45 = vmul.f32 %v517_v9, %v751_v4 }
 0x310   :  { %561 = vst [vmem:[#allocation6 + $0x38] sm:$0xff] %v545_v44  ;;  %564 = vst [vmem:[#allocation6 + $0x50] sm:$0xff] %v548_v45 }
 0x311   :  { %v513_v7 = vpop.permute.xlu1 %512  ;;  %v525_v13 = vpop.permute.xlu0 %524 }
 0x312   :  { %v547_v46 = vmul.f32 %v513_v7, %v745_v2  ;;  %v550_v47 = vmul.f32 %v525_v13, %v763_v8 }
 0x314   :  { %563 = vst [vmem:[#allocation6 + $0x48] sm:$0xff] %v547_v46  ;;  %566 = vst [vmem:[#allocation6 + $0x60] sm:$0xff] %v550_v47 }
 0x315   :  { %v521_v11 = vpop.permute.xlu1 %520  ;;  %v533_v0 = vpop.permute.xlu0 %532 }
 0x316   :  { %v549_v48 = vmul.f32 %v521_v11, %v757_v6  ;;  %v552_v49 = vmul.f32 %v533_v0, %v775_v12 }
 0x318   :  { %565 = vst [vmem:[#allocation6 + $0x58] sm:$0xff] %v549_v48  ;;  %568 = vst [vmem:[#allocation6 + $0x70] sm:$0xff] %v552_v49 }
 0x319   :  { %v529_v15 = vpop.permute.xlu1 %528 }
 0x31a   :  { %v551_v4 = vmul.f32 %v529_v15, %v769_v10 }
 0x31c   :  { %567 = vst [vmem:[#allocation6 + $0x68] sm:$0xff] %v551_v4 }
 0x31d   :  { %v537_v50 = vpop.permute.xlu1 %536 }
 0x31e   :  { %v553_v2 = vmul.f32 %v537_v50, %v781_v14 }
 0x320   :  { %569 = vst [vmem:[#allocation6 + $0x78] sm:$0xff] %v553_v2 }
 0x321   :  { %682 = shalt.err (!%p679_p12)
}
 0x322   :  { %s683_s19 = scalar_lea.hbm %s872_s3, 2048 }
 0x323   :  { %p684_p13 = scmp.ne.s32.totalorder %s872_s3, %s683_s19  ;;  %p687_p0 = scmp.lt.u32.totalorder %s683_s19, %s872_s3 }
 0x325   :  { %p689_p1 = pnand %p687_p0, %p684_p13 }
 0x327   :  { %692 = shalt.err (!%p689_p1)
}
 0x328   :  { %581 = dma.vmem_to_hbm [thread:$0]  %s576_s15, 2048, %s872_s3, [#allocation5], %s698_s22, %s698_s22, %s699_s23  }
 0x329   :  { %695 = dma.done.wait [#allocation5], 2048  }
 0x32a   :  { %696 = vsyncadd [#allocation5], 4294965248 }
 0x32b   :  { %585 = vsyncpa [#allocation4], 1 }
 0x32c   :  { %586 = vsyncpa [#allocation5], 1 }

</bundles_post_ra>
